<compile_context>
chip_gen: v5e
topology: v5e:2x2
jax: 0.10.0
libtpu: 0.0.40
codegen_flags: <defaults>
</compile_context>

<pallas_src>
import jax
import jax.numpy as jnp
from jax.experimental import pallas as pl
from jax.experimental.pallas import tpu as pltpu


def _cdiv(a: int, b: int) -> int:
    return -(-a // b)


def _round_up(a: int, m: int) -> int:
    return _cdiv(a, m) * m


def _sublane_pack(itemsize: int) -> int:
    # Sublane packing factor per dtype width (rows of a VMEM tile / vreg).
    return {4: 8, 2: 16, 1: 32}.get(itemsize, 8)


def make_positional_encoding_table(d_model: int, max_len: int = 5000) -> jnp.ndarray:
    """Builds pe of shape (1, max_len, d_model), matching the PyTorch buffer.

    Handles odd d_model (the cos half uses only floor(d_model/2) columns).
    Stays float32, like the registered buffer.
    """
    position = jnp.arange(0, max_len, dtype=jnp.float32)[:, None]            # (L, 1)
    div_term = jnp.exp(
        jnp.arange(0, d_model, 2, dtype=jnp.float32)
        * (-jnp.log(jnp.float32(10000.0)) / d_model))                        # (ceil(d/2),)
    angles = position * div_term                                             # (L, ceil(d/2))
    pe = jnp.zeros((max_len, d_model), dtype=jnp.float32)
    pe = pe.at[:, 0::2].set(jnp.sin(angles))
    pe = pe.at[:, 1::2].set(jnp.cos(angles[:, : d_model // 2]))
    return pe[None, :, :]                                                    # (1, L, d)


def _pe_add_kernel(x_ref, pe_ref, o_ref):
    # x_ref: (rows, tn) tile; pe_ref: (rows, tn) (folded layout) or (1, tn)
    # (broadcast over batch rows).  pe is float32; accumulate in f32, cast out.
    o_ref[...] = (x_ref[...].astype(jnp.float32) + pe_ref[...]).astype(o_ref.dtype)


def _tpu_budget():
    """Returns (vmem_limit_bytes, num_tensorcores); conservative if query fails."""
    vmem_cap = 64 << 20      # assume the smallest per-core VMEM (v7x) if unknown
    num_cores = 2            # assume megacore so each core still gets >=2 steps
    try:
        info = pltpu.get_tpu_info()
        cap = getattr(info, "vmem_capacity_bytes", None)
        if isinstance(cap, int) and cap > 0:
            vmem_cap = cap
        for attr in ("num_cores", "core_count", "num_tensorcores"):
            v = getattr(info, attr, None)
            if isinstance(v, int) and v > 0:
                num_cores = v
                break
    except Exception:
        pass
    # Headroom for Mosaic-internal scratch: 128 MiB parts -> 96 MiB, 64 MiB -> 48 MiB.
    vmem_limit = min((vmem_cap * 3) // 4, 96 << 20)
    return vmem_limit, num_cores


def _choose_tn(C, bpl_x, bpl_pe, n_row_blocks, vmem_limit, num_cores,
               target_block_bytes):
    """Lane-axis tile size (multiple of 128) for x/out blocks of `bpl_x` bytes/lane."""
    # Per-lane VMEM bytes: double-buffered x + out blocks plus double-buffered pe block.
    per_lane = 4 * bpl_x + 2 * bpl_pe
    budget = int(vmem_limit * 0.7)
    tn_vmem = max(128, (budget // per_lane) // 128 * 128)
    tn_goal = max(128, (target_block_bytes // bpl_x) // 128 * 128)
    tn = max(128, min(C, tn_vmem, tn_goal))
    # Give every TensorCore >= 2 grid steps so its HBM stream double-buffers,
    # but never shrink a block below 1024 lanes (8 vregs) to get there.
    min_steps = 2 * max(1, num_cores)
    if n_row_blocks * _cdiv(C, tn) < min_steps:
        want_tiles = _cdiv(min_steps, n_row_blocks)
        tn_split = _round_up(_cdiv(C, want_tiles), 128)
        tn = min(tn, max(tn_split, min(C, 1024)))
    return tn


def positional_encoding_forward(x: jnp.ndarray, pe: jnp.ndarray,
                                *, target_block_bytes: int = 8 << 20) -> jnp.ndarray:
    """x: (B, S, D); pe: (1, max_len, D) float32. Returns x + pe[:, :S, :] in x.dtype."""
    B, S, D = x.shape
    assert pe.shape[0] == 1 and pe.shape[2] == D and pe.shape[1] >= S
    N = S * D
    itemsize = jnp.dtype(x.dtype).itemsize
    pack = _sublane_pack(itemsize)

    # Fold the flattened axis into the sublane dim when batch is smaller than
    # the sublane pack (eliminates sublane-padding waste in VMEM blocks).
    fold = pack if B < pack else 1

    # Pad the flattened axis so the lane dim is always a multiple of 128
    # (small, sliced off afterwards) instead of a single full-array block.
    Np = _round_up(N, fold * 128)
    x2 = x.reshape(B, N)
    pe2 = pe[:, :S, :].reshape(1, N).astype(jnp.float32)   # keep PE in f32
    if Np != N:
        x2 = jnp.pad(x2, ((0, 0), (0, Np - N)))
        pe2 = jnp.pad(pe2, ((0, 0), (0, Np - N)))
    C = Np // fold

    if fold > 1:
        x_in = x2.reshape(B * fold, C)      # contiguous view reshape
        pe_in = pe2.reshape(fold, C)
        row_block, pe_rows, n_row_blocks = fold, fold, B
    else:
        x_in = x2
        pe_in = pe2
        row_block, pe_rows, n_row_blocks = B, 1, 1

    vmem_limit, num_cores = _tpu_budget()
    bpl_x = _round_up(row_block, pack) * itemsize           # padded-sublane bytes/lane
    bpl_pe = _round_up(pe_rows, 8) * 4                      # pe is f32
    tn = _choose_tn(C, bpl_x, bpl_pe, n_row_blocks, vmem_limit, num_cores,
                    target_block_bytes)
    n_tiles = _cdiv(C, tn)

    # Grid: (lane tiles, batch blocks) with batch innermost so the pe tile's
    # block index is constant across it (no re-fetch of pe per batch element).
    out = pl.pallas_call(
        _pe_add_kernel,
        out_shape=jax.ShapeDtypeStruct(x_in.shape, x.dtype),
        grid_spec=pltpu.PrefetchScalarGridSpec(
            num_scalar_prefetch=0,
            grid=(n_tiles, n_row_blocks),
            in_specs=[
                pl.BlockSpec((row_block, tn), lambda i, b: (b, i)),   # x tile
                pl.BlockSpec((pe_rows, tn), lambda i, b: (0, i)),     # pe tile (resident over b)
            ],
            out_specs=pl.BlockSpec((row_block, tn), lambda i, b: (b, i)),
        ),
        compiler_params=pltpu.CompilerParams(
            dimension_semantics=("parallel", "parallel"),
            vmem_limit_bytes=vmem_limit,
        ),
        input_output_aliases={0: 0},        # add in place on the x slab
    )(x_in, pe_in)

    out = out.reshape(B, Np)
    if Np != N:
        out = out[:, :N]
    return out.reshape(B, S, D)


if __name__ == "__main__":
    key = jax.random.PRNGKey(0)
    k1, k2 = jax.random.split(key)

    # Primary case: (batch, seq, d_model) consistent with the module's forward.
    B, S, D = 2, 8, 32
    max_len = 64
    pe_table = make_positional_encoding_table(D, max_len)
    x = jax.random.normal(k1, (B, S, D), dtype=jnp.float32)

    y = jax.block_until_ready(positional_encoding_forward(x, pe_table))
    ref = x + pe_table[:, :S, :]
    assert y.shape == (B, S, D)
    assert jnp.allclose(y, ref, atol=1e-6, rtol=1e-6)

    # Second case: exercises the no-padding folded path (N multiple of pack*128).
    B2, S2, D2 = 2, 32, 256
    pe_table2 = make_positional_encoding_table(D2, 128)
    x2 = jax.random.normal(k2, (B2, S2, D2), dtype=jnp.float32)
    y2 = jax.block_until_ready(positional_encoding_forward(x2, pe_table2))
    ref2 = x2 + pe_table2[:, :S2, :]
    assert y2.shape == (B2, S2, D2)
    assert jnp.allclose(y2, ref2, atol=1e-6, rtol=1e-6)

    print("KERNEL_OK")
</pallas_src>

<mosaic_0001>
module attributes {stable_mosaic.version = 11 : i64} {
  func.func @_pe_add_kernel(%arg0: i32, %arg1: i32, %arg2: memref<8x128xf32, #tpu.memory_space<vmem>>, %arg3: memref<8x128xf32, #tpu.memory_space<vmem>>, %arg4: memref<8x128xf32, #tpu.memory_space<vmem>>) attributes {dimension_semantics = [#tpu.dimension_semantics<parallel>, #tpu.dimension_semantics<parallel>], iteration_bounds = array<i64: 1, 2>, scalar_prefetch = 0 : i64, scratch_operands = 0 : i64, tpu.core_type = #tpu.core_type<tc>, window_params = [{transform_indices = @transform_0, window_bounds = array<i64: 8, 128>}, {transform_indices = @transform_1, window_bounds = array<i64: 8, 128>}, {transform_indices = @transform_2, window_bounds = array<i64: 8, 128>}]} {
    %c0 = arith.constant 0 : index
    %c0_0 = arith.constant 0 : index
    %0 = vector.load %arg2[%c0, %c0_0] : memref<8x128xf32, #tpu.memory_space<vmem>>, vector<8x128xf32>
    %c0_1 = arith.constant 0 : index
    %c0_2 = arith.constant 0 : index
    %1 = vector.load %arg3[%c0_1, %c0_2] : memref<8x128xf32, #tpu.memory_space<vmem>>, vector<8x128xf32>
    %2 = arith.addf %0, %1 : vector<8x128xf32>
    %c0_3 = arith.constant 0 : index
    %c0_4 = arith.constant 0 : index
    %3 = vector.load %arg4[%c0_3, %c0_4] : memref<8x128xf32, #tpu.memory_space<vmem>>, vector<8x128xf32>
    tpu.vector_store %arg4[%c0_3, %c0_4], %2 {strides = array<i32>} : memref<8x128xf32, #tpu.memory_space<vmem>>, vector<8x128xf32>,
    return
  }
  func.func @transform_0(%arg0: i32, %arg1: i32) -> (i32, i32) {
    %c0_i32 = arith.constant 0 : i32
    return %arg1, %arg0 : i32, i32
  }
  func.func @transform_1(%arg0: i32, %arg1: i32) -> (i32, i32) {
    %c0_i32 = arith.constant 0 : i32
    %c0_i32_0 = arith.constant 0 : i32
    return %c0_i32, %arg0 : i32, i32
  }
  func.func @transform_2(%arg0: i32, %arg1: i32) -> (i32, i32) {
    %c0_i32 = arith.constant 0 : i32
    return %arg1, %arg0 : i32, i32
  }
}

</mosaic_0001>

<bundles_post_ra>
// kernel: tpu_custom_call.1
= control target key start
LH: loop header
LB: loop body
LE: loop exit
PB: predicated region body
PF: predicated region fallthrough
CT: control target
= control target key end

     0   :  { %7 = vsyncpa [#allocation3], 0  ;;  %s639_s0 = inlined_call_operand.hbm [shape: f32[16,128], index: 0, kind: input, shape index: {}, may-alias: {0,2}]   ;;  %s640_s1 = inlined_call_operand.vmem [shape: f32[8,128], index: 1, kind: input, shape index: {}]   ;;  %s641_s2 = inlined_call_operand.hbm [shape: f32[16,128], index: 2, kind: output, shape index: {}, may-alias: {0,2}]  }
   0x1   :  { %9 = vsyncpa [#allocation3 + $0x1], 0 }
   0x2   :  { %10 = vsyncpa [#allocation4], 0 }
   0x3   :  { %12 = vsyncpa [#allocation4 + $0x1], 0  ;;  %s516_s9 = smov 0   ;;  %s518_s10 = smov 0  }
   0x4   :  { %s520_s11 = smov 0   ;;  %s522_s12 = smov 0  }
   0x5   :  { %s524_s13 = smov 0   ;;  %s526_s14 = smov 0  }
   0x6 LB: > { %s311_s15 = sadd.s32 4294967295, %s499_s14   ;;  %s312_s16 = sadd.s32 4294967294, %s499_s14   ;;  %s499_s14 = sphi %s526_s14, %s18_s14   ;;  %s495_s13 = sphi %s524_s13, %s650_s13   ;;  %s491_s12 = sphi %s522_s12, %s649_s12   ;;  %s487_s11 = sphi %s520_s11, %s648_s11   ;;  %s483_s10 = sphi %s518_s10, %s647_s10   ;;  %s479_s9 = sphi %s516_s9, %s646_s9  }
   0x7   : > { %s27_s17 = sadd.s32 1, %s495_s13  ;;  %s39_s18 = sadd.s32 1, %s487_s11 }
   0x8   : > { %p28_p0 = scmp.ge.s32.totalorder %s27_s17, 2  ;;  %p46_p1 = scmp.ne.s32.totalorder %s487_s11, %s483_s10 }
   0x9   : > { %p47_p2 = scmp.eq.s32.totalorder %s499_s14, 0  ;;  %p52_p3 = scmp.ne.s32.totalorder %s483_s10, %s479_s9 }
   0xa   : > { %s652_s17 = smov (%p28_p0, %s27_s17), 0  ;;  %p53_p5 = scmp.eq.s32.totalorder %s311_s15, 0 }
   0xb   : > { %p557_p4 = por %p47_p2, %p46_p1  ;;  %s34_s20 = ssub.s32 %s495_s13, %s652_s17 }
   0xc   : > { %p104_p6 = scmp.eq.s32.totalorder %s311_s15, 1  ;;  %p37_p7 = scmp.eq.s32.totalorder %s34_s20, 0 }
   0xd   : > { %p563_p8 = por %p53_p5, %p52_p3  ;;  %p110_p10 = scmp.eq.s32.totalorder %s312_s16, 1 }
   0xe   : > { %p567_p9 = por %p104_p6, %p46_p1  ;;  %p315_p12 = scmp.ge.s32.totalorder %s499_s14, 2 }
   0xf   : > { %s572_s23 = scalar_select %p37_p7, %s487_s11, %s39_s18  }
  0x10   : > { %p574_p11 = por %p110_p10, %p52_p3  ;;  %p337_p13 = scmp.lt.s32.totalorder %s499_s14, 2 }
  0x11   : > { %s137_s25 = sand.u32 1, %s487_s11   ;;  %s317_s27 = sshll.u32 %s495_s13, 3 }
  0x12   : > { %s316_s26 = sshll.u32 %s137_s25, 3  ;;  %s146_s30 = scalar_lea.hbm %s639_s0, %s317_s27 }
  0x13   : > { %s141_s3 = scalar_lea.vmem [#allocation2], %s316_s26  ;;  %s148_s5 = sshll.u32 %s146_s30, 4  ;;  %s149_s5 = int_to_ptr.hbm [resolvable:$true] %s148_s5 }
  0x14   : > { %s150_s4 = sshll.u32 %s141_s3, 4  ;;  %p330_p0 = pnand %p337_p13, %p557_p4  ;;  %s151_s4 = int_to_ptr.vmem [resolvable:$true] %s150_s4 }
  0x15   : > { %p318_p1 = scmp.ge.s32.totalorder %s499_s14, 1  ;;  %p155_p2 = scmp.lt.s32.totalorder %s499_s14, 3 }
  0x16   : > { %s138_s6 = scalar_lea.sflag [#allocation3], %s137_s25 }
  0x17   : > { %332 = dma.hbm_to_vmem [thread:$0]  (!%p330_p0), %s149_s5, 128, %s151_s4, %s138_s6  }
  0x18   : > { %p156_p3 = pnand %p318_p1, %p155_p2 }
  0x19   : > { %s590_s7 = sand.u32 (!%p156_p3), 1, %s483_s10  }
  0x1a   : > { %159 = sbr.rel (%p156_p3) target bundleno = 47 (0x2f), region = 28  ;;  %s319_s8 = sshll.u32 (!%p156_p3), %s590_s7, 3 }
  0x1b   : > { %s162_s15 = scalar_lea.sflag (!%p156_p3), [#allocation3], %s590_s7  ;;  %s165_s16 = scalar_lea.vmem (!%p156_p3), [#allocation2], %s319_s8 }
  0x1f   : > { %470 = dma.done.wait (%p563_p8), %s162_s15, 128  }
  0x20   : > { %472 = vsyncadd (%p563_p8), %s162_s15, 4294967168  ;;  %s322_s18 = sshll.u32 %s491_s12, 3  ;;  %s190_s26 = scalar_lea.vmem [#allocation5], %s319_s8  ;;  %v195_v0 = vld [vmem:[%s165_s16] sm:$0xff] }
  0x21   : > { %s211_s25 = scalar_lea.hbm %s641_s2, %s322_s18  ;;  %s213_s27 = sshll.u32 %s190_s26, 4  ;;  %v196_v1 = vld [vmem:[%s640_s1] sm:$0xff]  ;;  %s214_s27 = int_to_ptr.vmem [resolvable:$true] %s213_s27 }
  0x22   : > { %s215_s28 = sshll.u32 %s211_s25, 4  ;;  %v197_v2 = vadd.f32 %v196_v1, %v195_v0  ;;  %s200_s21 = scalar_lea.sflag [#allocation4], %s590_s7  ;;  %s216_s28 = int_to_ptr.hbm [resolvable:$true] %s215_s28 }
  0x23   : > { %s431_s3 = sshra.s32 %s216_s28, 4  ;;  %s437_s6 = scalar_lea.hbm %s641_s2, 16  ;;  %s432_s3 = int_to_ptr.hbm [resolvable:$true] %s431_s3 }
  0x24   : > { %198 = vst [vmem:[%s190_s26] sm:$0xff] %v197_v2  ;;  %s433_s12 = scalar_lea.hbm %s432_s3, 8  ;;  %p438_p7 = scmp.lt.s32.totalorder %s432_s3, %s641_s2 }
  0x25   : > { %p434_p4 = scmp.ne.s32.totalorder %s432_s3, %s433_s12  ;;  %p439_p8 = scmp.lt.s32.totalorder %s437_s6, %s433_s12 }
  0x27   : > { %p435_p5 = pnand %p434_p4, %p567_p9  ;;  %p440_p10 = por %p439_p8, %p438_p7 }
  0x29   : > { %p436_p6 = pneg %p435_p5 }
  0x2b   : > { %p441_p13 = pnand %p440_p10, %p436_p6 }
  0x2d   : > { %444 = shalt.err (!%p441_p13)
}
  0x2e   : > { %327 = dma.vmem_to_hbm [thread:$0]  (%p567_p9), %s214_s27, 128, %s216_s28, %s200_s21  }
  0x2f PF: > { %s227_s7 = sand.u32 1, %s479_s9   ;;  %p334_p0 = pnand %p315_p12, %p574_p11 }
  0x30   : > { %s228_s16 = scalar_lea.sflag [#allocation4], %s227_s7 }
  0x31   : > { %p335_p1 = pneg %p334_p0 }
  0x33   : > { %474 = dma.done.wait (%p335_p1), %s228_s16, 128  }
  0x34   : > { %476 = vsyncadd (%p335_p1), %s228_s16, 4294967168  ;;  %s18_s14 = sadd.s32 1, %s499_s14   ;;  %s646_s9 = smov %s483_s10 }
  0x35   : > { %p15_p2 = scmp.ge.s32.totalorder %s18_s14, 4   ;;  %s647_s10 = smov %s487_s11 }
  0x36   : > { %s648_s11 = smov %s572_s23  ;;  %s649_s12 = smov %s495_s13 }
  0x37   : > { %s650_s13 = smov %s652_s17  ;;  %17 = sbr.rel (!%p15_p2) target bundleno = 6 (0x6), region = 76 }
  0x3c   :  { %234 = vsyncpa [#allocation3], 1 }
  0x3d   :  { %236 = vsyncpa [#allocation3 + $0x1], 1 }
  0x3e   :  { %237 = vsyncpa [#allocation4], 1 }
  0x3f   :  { %239 = vsyncpa [#allocation4 + $0x1], 1 }

</bundles_post_ra>
